<compile_context>
chip_gen: v5e
topology: v5e:2x2
jax: 0.10.0
libtpu: 0.0.40
codegen_flags: <defaults>
</compile_context>

<pallas_src>
import functools

import jax
import jax.numpy as jnp
from jax.experimental import pallas as pl
from jax.experimental.pallas import tpu as pltpu


F_PAD = 128  # lane-dense padded feature width (n_feat / n_hid / n_class -> 128)


def _round_up(v, m):
    return (v + m - 1) // m * m


# ----------------------------------------------------------------------------
# Fused Pallas kernel: K GraphConv layers (+ReLU between) + masked log_softmax
# ----------------------------------------------------------------------------
def _gcn_fused_kernel(*refs, n_layers, n_class):
    """refs = (x, filt, w0, b0, ..., w_{K-1}, b_{K-1}, out).

    x    : [N_pad, F_PAD]  bf16
    filt : [N_pad, N_pad]  bf16   (resident in VMEM across all layers)
    W_k  : [F_PAD, F_PAD]  bf16   (zero-padded)
    b_k  : [1, F_PAD]      f32    (zero-padded)
    out  : [N_pad, F_PAD]  f32    (padded class lanes hold junk; sliced outside)
    """
    x_ref, f_ref = refs[0], refs[1]
    o_ref = refs[2 + 2 * n_layers]

    filt = f_ref[...]   # bf16 graph operator, loaded once
    h = x_ref[...]      # bf16 activations

    logits = None
    for k in range(n_layers):  # statically unrolled (K is small & fixed)
        w = refs[2 + 2 * k][...]      # [F_PAD, F_PAD] bf16
        b = refs[3 + 2 * k][...]      # [1, F_PAD]     f32
        # feature transform on the MXU (bf16 in, f32 accumulate)
        support = jnp.dot(h, w, preferred_element_type=jnp.float32)
        # neighborhood aggregation on the MXU
        out = jnp.dot(filt, support.astype(jnp.bfloat16),
                      preferred_element_type=jnp.float32)
        out = out + b                 # broadcast bias over nodes (f32)
        if k < n_layers - 1:
            h = jnp.maximum(out, 0.0).astype(jnp.bfloat16)   # ReLU
            # dropout: identity (eval mode)
        else:
            logits = out

    # Row-wise log_softmax over the real class lanes only (mask out padding).
    col = jax.lax.broadcasted_iota(jnp.int32, logits.shape, 1)
    valid = col < n_class
    masked = jnp.where(valid, logits, jnp.float32(-1e30))
    m = jnp.max(masked, axis=1, keepdims=True)
    z = masked - m
    ez = jnp.where(valid, jnp.exp(z), 0.0)
    lse = jnp.log(jnp.sum(ez, axis=1, keepdims=True))
    o_ref[...] = (z - lse).astype(o_ref.dtype)


# ----------------------------------------------------------------------------
# Wrapper: pad to lane-dense shapes, single pallas_call, slice logical result
# ----------------------------------------------------------------------------
@functools.partial(jax.jit, static_argnames=("n_class",))
def gcn_forward(params, x, filt, *, n_class):
    n, f_in = x.shape
    n_pad = _round_up(n, 8)        # sublane alignment for the node axis
    n_layers = len(params)

    # Pad inputs: feature dims -> F_PAD (lane-dense), matmul inputs -> bf16.
    x_p = jnp.zeros((n_pad, F_PAD), jnp.bfloat16)
    x_p = x_p.at[:n, :f_in].set(x.astype(jnp.bfloat16))
    filt_p = jnp.zeros((n_pad, n_pad), jnp.bfloat16)
    filt_p = filt_p.at[:n, :n].set(filt.astype(jnp.bfloat16))

    packed = []
    in_specs = [
        pl.BlockSpec((n_pad, F_PAD), lambda i: (0, 0)),
        pl.BlockSpec((n_pad, n_pad), lambda i: (0, 0)),
    ]
    for (w, b) in params:
        fi, fo = w.shape
        w_p = jnp.zeros((F_PAD, F_PAD), jnp.bfloat16)
        w_p = w_p.at[:fi, :fo].set(w.astype(jnp.bfloat16))
        b_p = jnp.zeros((1, F_PAD), jnp.float32)
        b_p = b_p.at[:, :fo].set(b.astype(jnp.float32))
        packed += [w_p, b_p]
        in_specs += [
            pl.BlockSpec((F_PAD, F_PAD), lambda i: (0, 0)),
            pl.BlockSpec((1, F_PAD), lambda i: (0, 0)),
        ]

    kernel = functools.partial(
        _gcn_fused_kernel, n_layers=n_layers, n_class=n_class)

    out_pad = pl.pallas_call(
        kernel,
        out_shape=jax.ShapeDtypeStruct((n_pad, F_PAD), jnp.float32),
        grid=(1,),
        in_specs=in_specs,
        out_specs=pl.BlockSpec((n_pad, F_PAD), lambda i: (0, 0)),
        compiler_params=pltpu.CompilerParams(
            dimension_semantics=("arbitrary",)),
    )(x_p, filt_p, *packed)

    return out_pad[:n, :n_class]


# ----------------------------------------------------------------------------
# Parameter setup (plain JAX, mirrors the PyTorch module's layer sizing)
# ----------------------------------------------------------------------------
def init_gcn_params(key, n_feat, n_hid, n_class, K):
    dims = []
    if K >= 2:
        dims.append((n_feat, n_hid))
        for _ in range(1, K - 1):
            dims.append((n_hid, n_hid))
        dims.append((n_hid, n_class))
    else:
        dims.append((n_feat, n_class))
    params = []
    for (fi, fo) in dims:
        key, kw, kb = jax.random.split(key, 3)
        scale = 1.0 / jnp.sqrt(jnp.float32(fi))
        w = jax.random.uniform(kw, (fi, fo), jnp.float32, -scale, scale)
        b = jax.random.uniform(kb, (1, fo), jnp.float32, -scale, scale)
        params.append((w, b))
    return params


# ----------------------------------------------------------------------------
if __name__ == "__main__":
    # small shapes consistent with the module
    N = 16        # number of graph nodes
    n_feat = 32
    n_hid = 32
    n_class = 8
    K = 3         # number of GraphConv layers
    enable_bias = True  # noqa: F841  (bias always materialized; zero if disabled)
    droprate = 0.5      # noqa: F841  (identity at inference)

    key = jax.random.PRNGKey(0)
    key, kx, ka = jax.random.split(key, 3)

    # node features
    x = jax.random.normal(kx, (N, n_feat), jnp.float32)

    # deterministic symmetric-normalized "filter" (graph operator)
    adj = (jax.random.uniform(ka, (N, N)) > 0.7).astype(jnp.float32)
    adj = jnp.maximum(adj, adj.T) + jnp.eye(N, dtype=jnp.float32)
    deg = jnp.sum(adj, axis=1)
    d_inv_sqrt = 1.0 / jnp.sqrt(deg)
    filt = adj * d_inv_sqrt[:, None] * d_inv_sqrt[None, :]

    params = init_gcn_params(key, n_feat, n_hid, n_class, K)

    out = gcn_forward(params, x, filt, n_class=n_class)
    out = jax.block_until_ready(out)

    # sanity: log_softmax rows should (log-)normalize to ~0
    row_logsumexp = jax.nn.logsumexp(out, axis=1)
    assert out.shape == (N, n_class)
    assert jnp.max(jnp.abs(row_logsumexp)) < 1e-4

    print("KERNEL_OK")
</pallas_src>

<mosaic_0001>
module attributes {stable_mosaic.version = 11 : i64} {
  func.func @_gcn_fused_kernel(%arg0: i32, %arg1: memref<16x128xbf16, #tpu.memory_space<vmem>>, %arg2: memref<16x16xbf16, #tpu.memory_space<vmem>>, %arg3: memref<128x128xbf16, #tpu.memory_space<vmem>>, %arg4: memref<1x128xf32, #tpu.memory_space<vmem>>, %arg5: memref<128x128xbf16, #tpu.memory_space<vmem>>, %arg6: memref<1x128xf32, #tpu.memory_space<vmem>>, %arg7: memref<128x128xbf16, #tpu.memory_space<vmem>>, %arg8: memref<1x128xf32, #tpu.memory_space<vmem>>, %arg9: memref<16x128xf32, #tpu.memory_space<vmem>>) attributes {dimension_semantics = [#tpu.dimension_semantics<arbitrary>], iteration_bounds = array<i64: 1>, scalar_prefetch = 0 : i64, scratch_operands = 0 : i64, tpu.core_type = #tpu.core_type<tc>, window_params = [{pipeline_mode = #tpu.pipeline_mode<synchronous>, transform_indices = @transform_0, window_bounds = array<i64: 16, 128>}, {pipeline_mode = #tpu.pipeline_mode<synchronous>, transform_indices = @transform_1, window_bounds = array<i64: 16, 16>}, {pipeline_mode = #tpu.pipeline_mode<synchronous>, transform_indices = @transform_2, window_bounds = array<i64: 128, 128>}, {pipeline_mode = #tpu.pipeline_mode<synchronous>, transform_indices = @transform_3, window_bounds = array<i64: 1, 128>}, {pipeline_mode = #tpu.pipeline_mode<synchronous>, transform_indices = @transform_4, window_bounds = array<i64: 128, 128>}, {pipeline_mode = #tpu.pipeline_mode<synchronous>, transform_indices = @transform_5, window_bounds = array<i64: 1, 128>}, {pipeline_mode = #tpu.pipeline_mode<synchronous>, transform_indices = @transform_6, window_bounds = array<i64: 128, 128>}, {pipeline_mode = #tpu.pipeline_mode<synchronous>, transform_indices = @transform_7, window_bounds = array<i64: 1, 128>}, {pipeline_mode = #tpu.pipeline_mode<synchronous>, transform_indices = @transform_8, window_bounds = array<i64: 16, 128>}]} {
    %c0 = arith.constant 0 : index
    %c0_0 = arith.constant 0 : index
    %0 = vector.load %arg2[%c0, %c0_0] : memref<16x16xbf16, #tpu.memory_space<vmem>>, vector<16x16xbf16>
    %c0_1 = arith.constant 0 : index
    %c0_2 = arith.constant 0 : index
    %1 = vector.load %arg1[%c0_1, %c0_2] : memref<16x128xbf16, #tpu.memory_space<vmem>>, vector<16x128xbf16>
    %c0_3 = arith.constant 0 : index
    %c0_4 = arith.constant 0 : index
    %2 = vector.load %arg3[%c0_3, %c0_4] : memref<128x128xbf16, #tpu.memory_space<vmem>>, vector<128x128xbf16>
    %c0_5 = arith.constant 0 : index
    %c0_6 = arith.constant 0 : index
    %3 = vector.load %arg4[%c0_5, %c0_6] : memref<1x128xf32, #tpu.memory_space<vmem>>, vector<1x128xf32>
    %cst = arith.constant dense<0.000000e+00> : vector<16x128xf32>
    %4 = tpu.matmul %1, %2, %cst {dimension_numbers = #tpu.dot_dimension_numbers<[1], [0], [0], [1], [0, 0, 1, 1], [], []>} : vector<16x128xbf16>, vector<128x128xbf16>, vector<16x128xf32> -> vector<16x128xf32>
    %5 = arith.truncf %4 : vector<16x128xf32> to vector<16x128xbf16>
    %cst_7 = arith.constant dense<0.000000e+00> : vector<16x128xf32>
    %6 = tpu.matmul %0, %5, %cst_7 {dimension_numbers = #tpu.dot_dimension_numbers<[1], [0], [0], [1], [0, 0, 1, 1], [], []>} : vector<16x16xbf16>, vector<16x128xbf16>, vector<16x128xf32> -> vector<16x128xf32>
    %7 = vector.broadcast %3 : vector<1x128xf32> to vector<16x128xf32>
    %8 = arith.addf %6, %7 : vector<16x128xf32>
    %cst_8 = arith.constant 0.000000e+00 : f32
    %9 = vector.broadcast %cst_8 : f32 to vector<16x128xf32>
    %10 = arith.maximumf %8, %9 : vector<16x128xf32>
    %11 = arith.truncf %10 : vector<16x128xf32> to vector<16x128xbf16>
    %c0_9 = arith.constant 0 : index
    %c0_10 = arith.constant 0 : index
    %12 = vector.load %arg5[%c0_9, %c0_10] : memref<128x128xbf16, #tpu.memory_space<vmem>>, vector<128x128xbf16>
    %c0_11 = arith.constant 0 : index
    %c0_12 = arith.constant 0 : index
    %13 = vector.load %arg6[%c0_11, %c0_12] : memref<1x128xf32, #tpu.memory_space<vmem>>, vector<1x128xf32>
    %cst_13 = arith.constant dense<0.000000e+00> : vector<16x128xf32>
    %14 = tpu.matmul %11, %12, %cst_13 {dimension_numbers = #tpu.dot_dimension_numbers<[1], [0], [0], [1], [0, 0, 1, 1], [], []>} : vector<16x128xbf16>, vector<128x128xbf16>, vector<16x128xf32> -> vector<16x128xf32>
    %15 = arith.truncf %14 : vector<16x128xf32> to vector<16x128xbf16>
    %cst_14 = arith.constant dense<0.000000e+00> : vector<16x128xf32>
    %16 = tpu.matmul %0, %15, %cst_14 {dimension_numbers = #tpu.dot_dimension_numbers<[1], [0], [0], [1], [0, 0, 1, 1], [], []>} : vector<16x16xbf16>, vector<16x128xbf16>, vector<16x128xf32> -> vector<16x128xf32>
    %17 = vector.broadcast %13 : vector<1x128xf32> to vector<16x128xf32>
    %18 = arith.addf %16, %17 : vector<16x128xf32>
    %cst_15 = arith.constant 0.000000e+00 : f32
    %19 = vector.broadcast %cst_15 : f32 to vector<16x128xf32>
    %20 = arith.maximumf %18, %19 : vector<16x128xf32>
    %21 = arith.truncf %20 : vector<16x128xf32> to vector<16x128xbf16>
    %c0_16 = arith.constant 0 : index
    %c0_17 = arith.constant 0 : index
    %22 = vector.load %arg7[%c0_16, %c0_17] : memref<128x128xbf16, #tpu.memory_space<vmem>>, vector<128x128xbf16>
    %c0_18 = arith.constant 0 : index
    %c0_19 = arith.constant 0 : index
    %23 = vector.load %arg8[%c0_18, %c0_19] : memref<1x128xf32, #tpu.memory_space<vmem>>, vector<1x128xf32>
    %cst_20 = arith.constant dense<0.000000e+00> : vector<16x128xf32>
    %24 = tpu.matmul %21, %22, %cst_20 {dimension_numbers = #tpu.dot_dimension_numbers<[1], [0], [0], [1], [0, 0, 1, 1], [], []>} : vector<16x128xbf16>, vector<128x128xbf16>, vector<16x128xf32> -> vector<16x128xf32>
    %25 = arith.truncf %24 : vector<16x128xf32> to vector<16x128xbf16>
    %cst_21 = arith.constant dense<0.000000e+00> : vector<16x128xf32>
    %26 = tpu.matmul %0, %25, %cst_21 {dimension_numbers = #tpu.dot_dimension_numbers<[1], [0], [0], [1], [0, 0, 1, 1], [], []>} : vector<16x16xbf16>, vector<16x128xbf16>, vector<16x128xf32> -> vector<16x128xf32>
    %27 = vector.broadcast %23 : vector<1x128xf32> to vector<16x128xf32>
    %28 = arith.addf %26, %27 : vector<16x128xf32>
    %29 = tpu.iota {dimensions = array<i32: 1>} : vector<16x128xi32>
    %c8_i32 = arith.constant 8 : i32
    %30 = vector.broadcast %c8_i32 : i32 to vector<16x128xi32>
    %31 = arith.cmpi slt, %29, %30 : vector<16x128xi32>
    %cst_22 = arith.constant -1.000000e+30 : f32
    %32 = vector.broadcast %cst_22 : f32 to vector<16x128xf32>
    %33 = arith.select %31, %28, %32 : vector<16x128xi1>, vector<16x128xf32>
    %cst_23 = arith.constant dense<0xFF800000> : vector<16xf32>
    %34 = vector.multi_reduction <maximumf>, %33, %cst_23 [1] : vector<16x128xf32> to vector<16xf32>
    %35 = vector.shape_cast %34 : vector<16xf32> to vector<16x1xf32>
    %36 = vector.broadcast %35 : vector<16x1xf32> to vector<16x128xf32>
    %37 = arith.subf %33, %36 : vector<16x128xf32>
    %38 = math.exp %37 : vector<16x128xf32>
    %cst_24 = arith.constant 0.000000e+00 : f32
    %39 = vector.broadcast %cst_24 : f32 to vector<16x128xf32>
    %40 = arith.select %31, %38, %39 : vector<16x128xi1>, vector<16x128xf32>
    %cst_25 = arith.constant dense<0.000000e+00> : vector<16xf32>
    %41 = vector.multi_reduction <add>, %40, %cst_25 [1] : vector<16x128xf32> to vector<16xf32>
    %42 = vector.shape_cast %41 : vector<16xf32> to vector<16x1xf32>
    %43 = math.log %42 : vector<16x1xf32>
    %44 = vector.broadcast %43 : vector<16x1xf32> to vector<16x128xf32>
    %45 = arith.subf %37, %44 : vector<16x128xf32>
    %c0_26 = arith.constant 0 : index
    %c0_27 = arith.constant 0 : index
    %46 = vector.load %arg9[%c0_26, %c0_27] : memref<16x128xf32, #tpu.memory_space<vmem>>, vector<16x128xf32>
    tpu.vector_store %arg9[%c0_26, %c0_27], %45 {strides = array<i32>} : memref<16x128xf32, #tpu.memory_space<vmem>>, vector<16x128xf32>,
    return
  }
  func.func @transform_0(%arg0: i32) -> (i32, i32) {
    %c0_i32 = arith.constant 0 : i32
    %c0_i32_0 = arith.constant 0 : i32
    %c0_i32_1 = arith.constant 0 : i32
    return %c0_i32, %c0_i32_0 : i32, i32
  }
  func.func @transform_1(%arg0: i32) -> (i32, i32) {
    %c0_i32 = arith.constant 0 : i32
    %c0_i32_0 = arith.constant 0 : i32
    %c0_i32_1 = arith.constant 0 : i32
    return %c0_i32, %c0_i32_0 : i32, i32
  }
  func.func @transform_2(%arg0: i32) -> (i32, i32) {
    %c0_i32 = arith.constant 0 : i32
    %c0_i32_0 = arith.constant 0 : i32
    %c0_i32_1 = arith.constant 0 : i32
    return %c0_i32, %c0_i32_0 : i32, i32
  }
  func.func @transform_3(%arg0: i32) -> (i32, i32) {
    %c0_i32 = arith.constant 0 : i32
    %c0_i32_0 = arith.constant 0 : i32
    %c0_i32_1 = arith.constant 0 : i32
    return %c0_i32, %c0_i32_0 : i32, i32
  }
  func.func @transform_4(%arg0: i32) -> (i32, i32) {
    %c0_i32 = arith.constant 0 : i32
    %c0_i32_0 = arith.constant 0 : i32
    %c0_i32_1 = arith.constant 0 : i32
    return %c0_i32, %c0_i32_0 : i32, i32
  }
  func.func @transform_5(%arg0: i32) -> (i32, i32) {
    %c0_i32 = arith.constant 0 : i32
    %c0_i32_0 = arith.constant 0 : i32
    %c0_i32_1 = arith.constant 0 : i32
    return %c0_i32, %c0_i32_0 : i32, i32
  }
  func.func @transform_6(%arg0: i32) -> (i32, i32) {
    %c0_i32 = arith.constant 0 : i32
    %c0_i32_0 = arith.constant 0 : i32
    %c0_i32_1 = arith.constant 0 : i32
    return %c0_i32, %c0_i32_0 : i32, i32
  }
  func.func @transform_7(%arg0: i32) -> (i32, i32) {
    %c0_i32 = arith.constant 0 : i32
    %c0_i32_0 = arith.constant 0 : i32
    %c0_i32_1 = arith.constant 0 : i32
    return %c0_i32, %c0_i32_0 : i32, i32
  }
  func.func @transform_8(%arg0: i32) -> (i32, i32) {
    %c0_i32 = arith.constant 0 : i32
    %c0_i32_0 = arith.constant 0 : i32
    %c0_i32_1 = arith.constant 0 : i32
    return %c0_i32, %c0_i32_0 : i32, i32
  }
}

</mosaic_0001>

<bundles_post_ra>
// kernel: gcn_forward.1
= control target key start
LH: loop header
LB: loop body
LE: loop exit
PB: predicated region body
PF: predicated region fallthrough
CT: control target
= control target key end

     0   :  { %vm128_vm0 = vcmask 130048   ;;  %v346_v51 = vlaneseq  ;;  %s668_s2 = inlined_call_operand.vmem [shape: bf16[128,128], index: 2, kind: input, shape index: {}]   ;;  %s669_s0 = inlined_call_operand.vmem [shape: bf16[16,128], index: 0, kind: input, shape index: {}]   ;;  %s670_s3 = inlined_call_operand.vmem [shape: f32[1,128], index: 3, kind: input, shape index: {}]   ;;  %s671_s4 = inlined_call_operand.vmem [shape: bf16[128,128], index: 4, kind: input, shape index: {}]   ;;  %s672_s1 = inlined_call_operand.vmem [shape: bf16[16,16], index: 1, kind: input, shape index: {}]   ;;  %s673_s5 = inlined_call_operand.vmem [shape: f32[1,128], index: 5, kind: input, shape index: {}]   ;;  %s674_s6 = inlined_call_operand.vmem [shape: bf16[128,128], index: 6, kind: input, shape index: {}]   ;;  %s675_s7 = inlined_call_operand.vmem [shape: f32[1,128], index: 7, kind: input, shape index: {}]   ;;  %s676_s8 = inlined_call_operand.vmem [shape: f32[16,128], index: 8, kind: output, shape index: {}]  }
   0x1   :  { %v495_v0 = vld [vmem:[%s668_s2 + $0x38] sm:$0xff]  ;;  %v494_v1 = vld [vmem:[%s668_s2 + $0x30] sm:$0xff]  ;;  %v493_v2 = vld [vmem:[%s668_s2 + $0x28] sm:$0xff] }
   0x2   :  { %105 = vmatpush.bf16.msra.mxu0 %v495_v0  ;;  %v492_v3 = vld [vmem:[%s668_s2 + $0x20] sm:$0xff]  ;;  %v491_v4 = vld [vmem:[%s668_s2 + $0x18] sm:$0xff]  ;;  %v490_v5 = vld [vmem:[%s668_s2 + $0x10] sm:$0xff]  ;;  %v347_v52 = vand.u32 127, %v346_v51 }
   0x3   :  { %v489_v6 = vld [vmem:[%s668_s2 + $0x8] sm:$0xff]  ;;  %v488_v7 = vld [vmem:[%s668_s2] sm:$0xff]  ;;  %v503_v9 = vld [vmem:[%s671_s4 + $0x38] sm:$0xff] }
   0x4   :  { %v487_v8 = vld [vmem:[%s669_s0] sm:$0xff]  ;;  %214 = vmatpush.bf16.msra.mxu2 %v503_v9  ;;  %v502_v10 = vld [vmem:[%s671_s4 + $0x30] sm:$0xff]  ;;  %v501_v11 = vld [vmem:[%s671_s4 + $0x28] sm:$0xff]  ;;  %vm348_vm1 = vcmp.lt.s32.totalorder %v347_v52, 8 }
   0x5   :  { %v500_v12 = vld [vmem:[%s671_s4 + $0x20] sm:$0xff]  ;;  %v499_v17 = vld [vmem:[%s671_s4 + $0x18] sm:$0xff]  ;;  %v498_v18 = vld [vmem:[%s671_s4 + $0x10] sm:$0xff] }
   0x6   :  { %106 = vmatpush.bf16.msra.mxu0 %v494_v1  ;;  %v486_v16 = vld [vmem:[%s672_s1] sm:$0xff]  ;;  %v497_v19 = vld [vmem:[%s671_s4 + $0x8] sm:$0xff]  ;;  %v511_v29 = vld [vmem:[%s674_s6 + $0x38] sm:$0xff] }
   0x7   :  { %v496_v20 = vld [vmem:[%s671_s4] sm:$0xff]  ;;  %v510_v30 = vld [vmem:[%s674_s6 + $0x30] sm:$0xff]  ;;  %v509_v31 = vld [vmem:[%s674_s6 + $0x28] sm:$0xff] }
   0x8   :  { %215 = vmatpush.bf16.msra.mxu2 %v502_v10  ;;  %v512_v22 = vld [vmem:[%s670_s3] ss:$0 sm:$0xff]  ;;  %v507_v36 = vld [vmem:[%s674_s6 + $0x18] sm:$0xff]  ;;  %v506_v37 = vld [vmem:[%s674_s6 + $0x10] sm:$0xff] }
   0x9   :  { %v508_v32 = vld [vmem:[%s674_s6 + $0x20] sm:$0xff]  ;;  %v505_v38 = vld [vmem:[%s674_s6 + $0x8] sm:$0xff] }
   0xa   :  { %107 = vmatpush.bf16.msra.mxu0 %v493_v2  ;;  %v504_v39 = vld [vmem:[%s674_s6] sm:$0xff] }
   0xb   :  { %v513_v41 = vld [vmem:[%s673_s5] ss:$0 sm:$0xff] }
   0xc   :  { %216 = vmatpush.bf16.msra.mxu2 %v501_v11  ;;  %v514_v53 = vld [vmem:[%s675_s7] ss:$0 sm:$0xff] }
   0xe   :  { %108 = vmatpush.bf16.msra.mxu0 %v492_v3 }
  0x10   :  { %217 = vmatpush.bf16.msra.mxu2 %v500_v12 }
  0x12   :  { %109 = vmatpush.bf16.msra.mxu0 %v491_v4 }
  0x14   :  { %218 = vmatpush.bf16.msra.mxu2 %v499_v17 }
  0x16   :  { %110 = vmatpush.bf16.msra.mxu0 %v490_v5 }
  0x18   :  { %219 = vmatpush.bf16.msra.mxu2 %v498_v18 }
  0x1a   :  { %111 = vmatpush.bf16.msra.mxu0 %v489_v6 }
  0x1c   :  { %220 = vmatpush.bf16.msra.mxu2 %v497_v19 }
  0x1e   :  { %112 = vmatpush.bf16.msra.mxu0 %v488_v7 }
  0x20   :  { %221 = vmatpush.bf16.msra.mxu2 %v496_v20 }
  0x21   :  { %113 = vmatmul.bf16.vlgmr.msra.gmra.mxu0 %v487_v8 }
  0x9e   :  { %v114_v13 = vpop.f32.mrf.mxu0 }
  0xa6   :  { %v116_v14 = vpop.f32.mrf.mxu0 }
  0xa7   :  { %v119_v15 = vpack.c.bf16 %v116_v14, %v114_v13 }
  0xa9   :  { %139 = vmatpush.bf16.msra.mxu1 %v119_v15 }
  0xac   :  { %419 = vmatmul.msk.bf16.vlgmr.msra.gmra.mxu1 %vm128_vm0, %v486_v16 }
  0xad   :  { %314 = vmatpush.bf16.msrb.mxu1 %v511_v29 }
  0xb1   :  { %315 = vmatpush.bf16.msrb.mxu1 %v510_v30 }
  0xb5   :  { %316 = vmatpush.bf16.msrb.mxu1 %v509_v31 }
  0xb9   :  { %317 = vmatpush.bf16.msrb.mxu1 %v508_v32 }
  0xbd   :  { %318 = vmatpush.bf16.msrb.mxu1 %v507_v36 }
  0xc1   :  { %319 = vmatpush.bf16.msrb.mxu1 %v506_v37 }
  0xc5   :  { %320 = vmatpush.bf16.msrb.mxu1 %v505_v38 }
  0xc9   :  { %321 = vmatpush.bf16.msrb.mxu1 %v504_v39 }
 0x129   :  { %v141_v21 = vpop.f32.mrf.mxu1 }
 0x12a   :  { %v142_v23 = vadd.f32 %v512_v22, %v141_v21 }
 0x12c   :  { %v146_v26 = vmax.f32 %v142_v23, 0.0 }
 0x131   :  { %v143_v24 = vpop.f32.mrf.mxu1 }
 0x132   :  { %v144_v25 = vadd.f32 %v512_v22, %v143_v24 }
 0x134   :  { %v147_v27 = vmax.f32 %v144_v25, 0.0 }
 0x136   :  { %v148_v28 = vpack.c.bf16 %v147_v27, %v146_v26 }
 0x138   :  { %222 = vmatmul.bf16.vlgmr.msra.gmra.mxu2 %v148_v28 }
 0x1bb   :  { %v223_v33 = vpop.f32.mrf.mxu2 }
 0x1c3   :  { %v225_v34 = vpop.f32.mrf.mxu2 }
 0x1c4   :  { %v228_v35 = vpack.c.bf16 %v225_v34, %v223_v33 }
 0x1c6   :  { %239 = vmatpush.bf16.msra.mxu3 %v228_v35 }
 0x1c9   :  { %452 = vmatmul.msk.bf16.vlgmr.msra.gmra.mxu3 %vm128_vm0, %v486_v16 }
 0x24c   :  { %v241_v40 = vpop.f32.mrf.mxu3 }
 0x24d   :  { %v242_v42 = vadd.f32 %v513_v41, %v241_v40 }
 0x24f   :  { %v246_v45 = vmax.f32 %v242_v42, 0.0 }
 0x254   :  { %v243_v43 = vpop.f32.mrf.mxu3 }
 0x255   :  { %v244_v44 = vadd.f32 %v513_v41, %v243_v43 }
 0x257   :  { %v247_v46 = vmax.f32 %v244_v44, 0.0 }
 0x259   :  { %v248_v47 = vpack.c.bf16 %v247_v46, %v246_v45 }
 0x25b   :  { %322 = vmatmul.bf16.vlgmr.msrb.gmra.mxu1 %v248_v47 }
 0x2d8   :  { %v323_v48 = vpop.f32.mrf.mxu1 }
 0x2e0   :  { %v325_v49 = vpop.f32.mrf.mxu1 }
 0x2e1   :  { %v328_v50 = vpack.c.bf16 %v325_v49, %v323_v48 }
 0x2e3   :  { %339 = vmatpush.bf16.msrb.mxu3 %v328_v50 }
 0x2e6   :  { %485 = vmatmul.msk.bf16.vlgmr.msrb.gmra.mxu3 %vm128_vm0, %v486_v16 }
 0x369   :  { %v341_v54 = vpop.f32.mrf.mxu3 }
 0x36a   :  { %v342_v55 = vadd.f32 %v514_v53, %v341_v54 }
 0x36c   :  { %v349_v56 = vsel %vm348_vm1, %v342_v55, -1e+30 }
 0x36d   :  { %351 = vmax.xlane.f32.xlu0 %v349_v56 }
 0x371   :  { %v343_v57 = vpop.f32.mrf.mxu3 }
 0x372   :  { %v344_v58 = vadd.f32 %v514_v53, %v343_v57 }
 0x374   :  { %v350_v59 = vsel %vm348_vm1, %v344_v58, -1e+30 }
 0x375   :  { %353 = vmax.xlane.f32.xlu0 %v350_v59 }
 0x3e0   :  { %v352_v60 = vpop.xlane.xlu0 %351 }
 0x3e1   :  { %v355_v61 = vsub.f32 %v349_v56, %v352_v60 }
 0x3e3   :  { %v357_v62 = vmul.f32 1.442695, %v355_v61 }
 0x3e5   :  { %515 = vpow2.f32 %v357_v62 }
 0x3e8   :  { %v354_v63 = vpop.xlane.xlu0 %353 }
 0x3e9   :  { %v356_v0 = vsub.f32 %v350_v59, %v354_v63 }
 0x3eb   :  { %v516_v1 = vpop.eup %515  ;;  %v359_v2 = vmul.f32 1.442695, %v356_v0 }
 0x3ec   :  { %v361_v3 = vsel %vm348_vm1, %v516_v1, 0.0 }
 0x3ed   :  { %517 = vpow2.f32 %v359_v2  ;;  %363 = vadd.xlane.f32.xlu1 %v361_v3 }
 0x3f3   :  { %v518_v4 = vpop.eup %517 }
 0x3f4   :  { %v362_v5 = vsel %vm348_vm1, %v518_v4, 0.0 }
 0x3f5   :  { %365 = vadd.xlane.f32.xlu1 %v362_v5 }
 0x460   :  { %v364_v6 = vpop.xlane.xlu1 %363 }
 0x461   :  { %519 = vlog2.f32 %v364_v6 }
 0x467   :  { %v520_v7 = vpop.eup %519 }
 0x468   :  { %v368_v8 = vmul.f32 0.6931472, %v520_v7  ;;  %v366_v9 = vpop.xlane.xlu1 %365 }
 0x469   :  { %521 = vlog2.f32 %v366_v9 }
 0x46a   :  { %v371_v10 = vsub.f32 %v355_v61, %v368_v8 }
 0x46c   :  { %373 = vst [vmem:[%s676_s8] sm:$0xff] %v371_v10 }
 0x46f   :  { %v522_v11 = vpop.eup %521 }
 0x470   :  { %v370_v12 = vmul.f32 0.6931472, %v522_v11 }
 0x472   :  { %v372_v13 = vsub.f32 %v356_v0, %v370_v12 }
 0x474   :  { %374 = vst [vmem:[%s676_s8 + $0x8] sm:$0xff] %v372_v13 }

</bundles_post_ra>
